<compile_context>
chip_gen: v7x
topology: tpu7x:2x2x1
jax: 0.10.0
libtpu: 0.0.40
codegen_flags: <defaults>
</compile_context>

<pallas_src>
import jax
import jax.numpy as jnp
from jax.experimental import pallas as pl
from jax.experimental.pallas import tpu as pltpu


def _round_up(x, m):
    return ((x + m - 1) // m) * m


def dense_readout_kernel(x_ref, w_ref, o_ref):
    # x_ref: (TB, K) native dtype, w_ref: (K, NP) bf16, o_ref: (TB, N) f32.
    # Cast x to bf16 in-kernel (VPU, free slot) and run one fused MXU matmul
    # with f32 accumulation; store only the N valid filter columns.
    acc = jnp.dot(x_ref[...].astype(jnp.bfloat16), w_ref[...],
                  preferred_element_type=jnp.float32)
    o_ref[...] = acc[:, :o_ref.shape[-1]]


def dense_readout(x_flat, ws, wf, input_dims, *, block_b=1024):
    """x_flat: [B, C*H*W*1] (or reshapeable to it), ws: [H, W, N], wf: [C, N]."""
    C, H, W, L = input_dims
    assert L == 1, "DenseReadout cannot have time lags"
    S = H * W
    K = C * S
    N = wf.shape[-1]

    # Fused Kronecker weight, built in f32 then cast once (tiny array):
    #   Wc[c*S + s, n] = wf[c, n] * ws[s, n]
    ws2 = ws.reshape(S, N).astype(jnp.float32)
    wf2 = wf.astype(jnp.float32)
    wc = (wf2[:, None, :] * ws2[None, :, :]).reshape(K, N)

    # Pad the filter dim of the MXU operand to a full 128-lane width; the
    # kernel only stores the first N columns, so the pad never hits HBM output.
    NP = _round_up(max(N, 128), 128)
    wc_p = jnp.zeros((K, NP), jnp.float32).at[:, :N].set(wc).astype(jnp.bfloat16)

    # Lane-dense 2-D input [B, K] in its native dtype (no wrapper cast pass).
    x2 = x_flat.reshape(-1, K)
    B = x2.shape[0]

    # Batch tile: multiple of 16, capped by block_b and by ceil(B/2) so that
    # (when B is large enough) there are >=2 grid tiles for megacore sharding.
    # TB=1024 with f32 x: 2 x 4 MiB x-buffers + 2 x 0.25 MiB weight buffers
    # + tiny outputs ~= 8.6 MiB -> under the 16 MiB default scoped VMEM (v5e)
    # and well under v6e/v7x defaults.
    TB = min(block_b, _round_up(max(pl.cdiv(B, 2), 1), 16))
    grid_b = pl.cdiv(B, TB)   # ragged last tile handled by Pallas masking

    x_bytes = x2.dtype.itemsize
    cost = pl.CostEstimate(
        flops=2 * B * K * NP,
        bytes_accessed=B * K * x_bytes + K * NP * 2 + B * N * 4,
        transcendentals=0,
    )

    out = pl.pallas_call(
        dense_readout_kernel,
        out_shape=jax.ShapeDtypeStruct((B, N), jnp.float32),
        grid_spec=pltpu.PrefetchScalarGridSpec(
            num_scalar_prefetch=0,
            grid=(grid_b,),
            in_specs=[
                pl.BlockSpec((TB, K), lambda i: (i, 0)),   # streamed x tiles
                pl.BlockSpec((K, NP), lambda i: (0, 0)),   # resident fused weight
            ],
            out_specs=pl.BlockSpec((TB, N), lambda i: (i, 0)),
        ),
        compiler_params=pltpu.CompilerParams(
            dimension_semantics=("parallel",),  # megacore splits batch tiles
        ),
        cost_estimate=cost,
    )(x2, wc_p)

    return out


if __name__ == "__main__":
    # Small config consistent with input_dims = [channels, H, W, 1].
    C, H, W = 4, 16, 16
    input_dims = [C, H, W, 1]
    num_filters = 8
    B = 2

    key = jax.random.PRNGKey(0)
    kx, kf, ks = jax.random.split(key, 3)

    # Deterministic synthetic parameters (shapes from NDNLayer __init__):
    #   feature layer: input_dims=[C,1,1,1] -> wf [C, N]
    #   space layer:   input_dims=[1,H,W,1] -> ws [H, W, N]
    wf = jax.random.normal(kf, (C, num_filters), dtype=jnp.float32) * 0.1
    ws = jax.random.normal(ks, (H, W, num_filters), dtype=jnp.float32) * 0.1

    # Flat input the PyTorch forward would .view() back to [B, C, H, W, 1].
    x = jax.random.normal(kx, (B, C * H * W * 1), dtype=jnp.float32)

    # TODO(synk): preprocess_weights / regularization losses (l1/l2) are
    # training-time extras of NDNLayer, not part of this forward pass.
    out = dense_readout(x, ws, wf, input_dims)
    out = jax.block_until_ready(out)

    # Reference: torch.einsum('bcxyl,xyn,cn->bn', ...) in f32.
    x5 = x.reshape(B, C, H, W, 1)
    ref = jnp.einsum('bcxyl,xyn,cn->bn', x5, ws, wf)
    assert out.shape == (B, num_filters)
    # bf16 x / bf16 fused weight with f32 accumulation -> relaxed tolerance.
    assert jnp.allclose(out, ref, atol=2e-2, rtol=2e-2), float(
        jnp.max(jnp.abs(out - ref)))

    print("KERNEL_OK")
</pallas_src>

<mosaic_0001>
module attributes {stable_mosaic.version = 11 : i64} {
  func.func @dense_readout_kernel(%arg0: i32, %arg1: memref<16x1024xf32, #tpu.memory_space<vmem>>, %arg2: memref<1024x128xbf16, #tpu.memory_space<vmem>>, %arg3: memref<16x8xf32, #tpu.memory_space<vmem>>) attributes {dimension_semantics = [#tpu.dimension_semantics<parallel>], iteration_bounds = array<i64: 1>, scalar_prefetch = 0 : i64, scratch_operands = 0 : i64, tpu.core_type = #tpu.core_type<tc>, window_params = [{transform_indices = @transform_0, window_bounds = array<i64: 16, 1024>}, {pipeline_mode = #tpu.pipeline_mode<synchronous>, transform_indices = @transform_1, window_bounds = array<i64: 1024, 128>}, {transform_indices = @transform_2, window_bounds = array<i64: 16, 8>}]} {
    %c0 = arith.constant 0 : index
    %c0_0 = arith.constant 0 : index
    %0 = vector.load %arg1[%c0, %c0_0] : memref<16x1024xf32, #tpu.memory_space<vmem>>, vector<16x1024xf32>
    %1 = arith.truncf %0 : vector<16x1024xf32> to vector<16x1024xbf16>
    %c0_1 = arith.constant 0 : index
    %c0_2 = arith.constant 0 : index
    %2 = vector.load %arg2[%c0_1, %c0_2] : memref<1024x128xbf16, #tpu.memory_space<vmem>>, vector<1024x128xbf16>
    %cst = arith.constant dense<0.000000e+00> : vector<16x128xf32>
    %3 = tpu.matmul %1, %2, %cst {dimension_numbers = #tpu.dot_dimension_numbers<[1], [0], [0], [1], [0, 0, 1, 1], [], []>} : vector<16x1024xbf16>, vector<1024x128xbf16>, vector<16x128xf32> -> vector<16x128xf32>
    %4 = vector.extract_strided_slice %3 {offsets = [0, 0], sizes = [16, 8], strides = [1, 1]} : vector<16x128xf32> to vector<16x8xf32>
    %c0_3 = arith.constant 0 : index
    %c0_4 = arith.constant 0 : index
    %5 = vector.load %arg3[%c0_3, %c0_4] : memref<16x8xf32, #tpu.memory_space<vmem>>, vector<16x8xf32>
    tpu.vector_store %arg3[%c0_3, %c0_4], %4 {strides = array<i32>} : memref<16x8xf32, #tpu.memory_space<vmem>>, vector<16x8xf32>,
    return
  }
  func.func @transform_0(%arg0: i32) -> (i32, i32) {
    %c0_i32 = arith.constant 0 : i32
    %c0_i32_0 = arith.constant 0 : i32
    return %arg0, %c0_i32 : i32, i32
  }
  func.func @transform_1(%arg0: i32) -> (i32, i32) {
    %c0_i32 = arith.constant 0 : i32
    %c0_i32_0 = arith.constant 0 : i32
    %c0_i32_1 = arith.constant 0 : i32
    return %c0_i32, %c0_i32_0 : i32, i32
  }
  func.func @transform_2(%arg0: i32) -> (i32, i32) {
    %c0_i32 = arith.constant 0 : i32
    %c0_i32_0 = arith.constant 0 : i32
    return %arg0, %c0_i32 : i32, i32
  }
}

</mosaic_0001>

<bundles_post_ra>
// kernel: tpu_custom_call.1
= control target key start
LH: loop header
LB: loop body
LE: loop exit
PB: predicated region body
PF: predicated region fallthrough
CT: control target
= control target key end

     0   :  { %7 = vsyncpa [#allocation3], 0  ;;  %s1339_s0 = inlined_call_operand.hbm [shape: f32[2,1024], index: 0, kind: input, shape index: {}]   ;;  %s1340_s1 = inlined_call_operand.hbm [shape: bf16[1024,128], index: 1, kind: input, shape index: {}]   ;;  %s1341_s2 = inlined_call_operand.hbm [shape: f32[2,8], index: 2, kind: output, shape index: {}]  }
   0x1   :  { %8 = vsyncpa [#allocation6], 0 }
   0x2   :  { %9 = vsyncpa [#allocation4], 0 }
   0x3   :  { %14 = vsyncadd [#allocation3], 1792  ;;  %s1260_s9 = smov [#allocation2]   ;;  %s1188_s13 = scalar_lea.hbm %s1339_s0, 256 }
   0x4   :  { %s15_s10 = sshll.u32 %s1260_s9, 4  ;;  %p1189_p0 = scmp.ne.s32.totalorder %s1339_s0, %s1188_s13  ;;  %s16_s10 = int_to_ptr.vmem [resolvable:$true] %s15_s10 }
   0x5   :  { %p1192_p1 = scmp.lt.u32.totalorder %s1188_s13, %s1339_s0 }
   0x7   :  { %p1194_p2 = pnand %p1192_p1, %p1189_p0 }
   0x9   :  { %1197 = shalt.err (!%p1194_p2)
}
   0xa   :  { %s1198_s18 = scalar_lea.vmem %s16_s10, 256  ;;  %s1202_s19 = scalar_lea.vmem %s16_s10, 2048 }
   0xb   :  { %p1199_p3 = scmp.ne.s32.totalorder %s16_s10, %s1198_s18  ;;  %p1203_p4 = scmp.lt.s32.totalorder %s16_s10, %s16_s10 }
   0xc   :  { %p1204_p5 = scmp.lt.s32.totalorder %s1202_s19, %s1198_s18 }
   0xe   :  { %p1205_p6 = por %p1204_p5, %p1203_p4 }
  0x10   :  { %p1206_p7 = pnand %p1205_p6, %p1199_p3 }
  0x12   :  { %1209 = shalt.err (!%p1206_p7)
}
  0x13   :  { %s1261_s20 = smov 256   ;;  %s1262_s21 = smov 16  }
  0x14   :  { %21 = dma.hbm_to_vmem [thread:$0]  %s1339_s0, 256, %s16_s10, [#allocation3], %s1261_s20, %s1261_s20, %s1262_s21  }
  0x15   :  { %s1263_s24 = smov [#allocation5]   ;;  %s1210_s28 = scalar_lea.hbm %s1340_s1, 8192 }
  0x16   :  { %s27_s25 = sshll.u32 %s1263_s24, 4  ;;  %p1211_p8 = scmp.ne.s32.totalorder %s1340_s1, %s1210_s28  ;;  %s28_s25 = int_to_ptr.vmem [resolvable:$true] %s27_s25 }
  0x17   :  { %p1214_p9 = scmp.lt.u32.totalorder %s1210_s28, %s1340_s1 }
  0x19   :  { %p1216_p10 = pnand %p1214_p9, %p1211_p8 }
  0x1b   :  { %1219 = shalt.err (!%p1216_p10)
}
  0x1c   :  { %s1220_s5 = scalar_lea.vmem %s28_s25, 8192  ;;  %p1225_p12 = scmp.lt.s32.totalorder %s28_s25, %s28_s25 }
  0x1d   :  { %p1221_p11 = scmp.ne.s32.totalorder %s28_s25, %s1220_s5  ;;  %p1226_p13 = scmp.lt.s32.totalorder %s1220_s5, %s1220_s5 }
  0x1f   :  { %p1227_p0 = por %p1226_p13, %p1225_p12 }
  0x21   :  { %p1228_p1 = pnand %p1227_p0, %p1221_p11 }
  0x23   :  { %1231 = shalt.err (!%p1228_p1)
}
  0x24   :  { %s1264_s0 = smov 64   ;;  %s1265_s6 = smov 4  }
  0x25   :  { %33 = dma.hbm_to_vmem [thread:$0]  %s1340_s1, 8192, %s28_s25, [#allocation6], %s1264_s0, %s1264_s0, %s1265_s6  }
  0x26   :  { %1254 = dma.done.wait [#allocation3], 2048  }
  0x27   :  { %1255 = vsyncadd [#allocation3], 4294965248 }
  0x28   :  { %1256 = dma.done.wait [#allocation6], 8192  }
  0x29   :  { %1257 = vsyncadd [#allocation6], 4294959104  ;;  %v1100_v0 = vld [vmem:[#allocation5 + $0x40] sm:$0xff]   ;;  %v1104_v4 = vld [vmem:[#allocation5 + $0x48] sm:$0xff]   ;;  %v1266_v25 = vmov 1983009808   ;;  %v80_v27 = vlaneseq }
  0x2a   :  { %v1101_v1 = vld [vmem:[#allocation5 + $0xc0] sm:$0xff]   ;;  %1002 = vmatprep.subr.bf16.mxu0 %v1100_v0  ;;  %v1105_v5 = vld [vmem:[#allocation5 + $0xc8] sm:$0xff]   ;;  %v1108_v8 = vld [vmem:[#allocation5 + $0x50] sm:$0xff]   ;;  %v78_v26 = vunpack.c.l.s4 %v1266_v25  ;;  %vm917_vm0 = vcmask 64512  }
  0x2b   :  { %v1102_v2 = vld [vmem:[#allocation5] sm:$0xff]   ;;  %1024 = vmatprep.subr.bf16.mxu1 %v1101_v1  ;;  %v1106_v6 = vld [vmem:[#allocation5 + $0x8] sm:$0xff]   ;;  %v1109_v9 = vld [vmem:[#allocation5 + $0xd0] sm:$0xff]   ;;  %v81_v33 = vshrl.u32 %v80_v27, 7 }
  0x2c   :  { %v1103_v3 = vld [vmem:[#allocation5 + $0x80] sm:$0xff]   ;;  %1003 = vmatpush3.bf16.msra.mxu0 %v1102_v2  ;;  %v1107_v7 = vld [vmem:[#allocation5 + $0x88] sm:$0xff]   ;;  %v1110_v10 = vld [vmem:[#allocation5 + $0x10] sm:$0xff]   ;;  %v79_v32 = vunpack.c.0.s8 %v78_v26 }
  0x2d   :  { %1025 = vmatpush3.bf16.msra.mxu1 %v1103_v3  ;;  %1004 = vmatprep.subr.bf16.mxu0 %v1104_v4  ;;  %v1111_v11 = vld [vmem:[#allocation5 + $0x90] sm:$0xff]   ;;  %v1112_v12 = vld [vmem:[#allocation5 + $0x58] sm:$0xff]   ;;  %v1116_v16 = vld [vmem:[#allocation5 + $0x60] sm:$0xff]  }
  0x2e   :  { %1026 = vmatprep.subr.bf16.mxu1 %v1105_v5  ;;  %v1113_v13 = vld [vmem:[#allocation5 + $0xd8] sm:$0xff]   ;;  %v1117_v17 = vld [vmem:[#allocation5 + $0xe0] sm:$0xff]   ;;  %v1120_v20 = vld [vmem:[#allocation5 + $0x68] sm:$0xff]   ;;  %v1309_v37 = vsub.s32 %v79_v32, %v81_v33 }
  0x2f   :  { %v1114_v14 = vld [vmem:[#allocation5 + $0x18] sm:$0xff]   ;;  %v1118_v18 = vld [vmem:[#allocation5 + $0x20] sm:$0xff]   ;;  %v1121_v21 = vld [vmem:[#allocation5 + $0xe8] sm:$0xff]  }
  0x30   :  { %1005 = vmatpush3.bf16.msra.mxu0 %v1106_v6  ;;  %v1115_v15 = vld [vmem:[#allocation5 + $0x98] sm:$0xff]   ;;  %v1119_v19 = vld [vmem:[#allocation5 + $0xa0] sm:$0xff]   ;;  %v1122_v22 = vld [vmem:[#allocation5 + $0x28] sm:$0xff]  }
  0x31   :  { %1027 = vmatpush3.bf16.msra.mxu1 %v1107_v7  ;;  %1006 = vmatprep.subr.bf16.mxu0 %v1108_v8  ;;  %v1123_v23 = vld [vmem:[#allocation5 + $0xa8] sm:$0xff]   ;;  %v1124_v24 = vld [vmem:[#allocation5 + $0x70] sm:$0xff]   ;;  %v1128_v31 = vld [vmem:[#allocation5 + $0x78] sm:$0xff]  }
  0x32   :  { %1028 = vmatprep.subr.bf16.mxu1 %v1109_v9  ;;  %v1125_v28 = vld [vmem:[#allocation5 + $0xf0] sm:$0xff]   ;;  %v1129_v34 = vld [vmem:[#allocation5 + $0xf8] sm:$0xff]   ;;  %v1144_v53 = vld [vmem:[#allocation5 + $0x140] sm:$0xff]  }
  0x33   :  { %v1126_v29 = vld [vmem:[#allocation5 + $0x30] sm:$0xff]   ;;  %v1130_v35 = vld [vmem:[#allocation5 + $0x38] sm:$0xff]   ;;  %v1145_v58 = vld [vmem:[#allocation5 + $0x1c0] sm:$0xff]  }
  0x34   :  { %1007 = vmatpush3.bf16.msra.mxu0 %v1110_v10  ;;  %v1127_v30 = vld [vmem:[#allocation5 + $0xb0] sm:$0xff]   ;;  %v1131_v36 = vld [vmem:[#allocation5 + $0xb8] sm:$0xff]   ;;  %v1146_v62 = vld [vmem:[#allocation5 + $0x100] sm:$0xff]  }
  0x35   :  { %1029 = vmatpush3.bf16.msra.mxu1 %v1111_v11  ;;  %1008 = vmatprep.subr.bf16.mxu0 %v1112_v12  ;;  %v1132_v38 = vld [vmem:[#allocation2] ss:$16 sps:$4 sm:$0xff]   ;;  %v1140_v43 = vld [vmem:[#allocation2 + $0x4] ss:$16 sps:$4 sm:$0xff]   ;;  %v1148_v4 = vld [vmem:[#allocation5 + $0x148] sm:$0xff]  }
  0x36   :  { %1030 = vmatprep.subr.bf16.mxu1 %v1113_v13  ;;  %v1134_v39 = vld [vmem:[#allocation2 + $0x20] ss:$16 sps:$4 sm:$0xff]   ;;  %v83_v42 = vrot.slane %v1132_v38, %v1309_v37  ;;  %v1141_v44 = vld [vmem:[#allocation2 + $0x24] ss:$16 sps:$4 sm:$0xff]   ;;  %v90_v50 = vrot.slane %v1140_v43, %v1309_v37  ;;  %v1149_v7 = vld [vmem:[#allocation5 + $0x1c8] sm:$0xff]  }
  0x37   :  { %v1136_v40 = vld [vmem:[#allocation2 + $0x40] ss:$16 sps:$4 sm:$0xff]   ;;  %v1142_v45 = vld [vmem:[#allocation2 + $0x44] ss:$16 sps:$4 sm:$0xff]   ;;  %v97_v46 = vrot.slane %v1134_v39, %v1309_v37  ;;  %v104_v51 = vrot.slane %v1141_v44, %v1309_v37  ;;  %v1150_v8 = vld [vmem:[#allocation5 + $0x108] sm:$0xff]  }
  0x38   :  { %1009 = vmatpush3.bf16.msra.mxu0 %v1114_v14  ;;  %v1138_v41 = vld [vmem:[#allocation2 + $0x60] ss:$16 sps:$4 sm:$0xff]   ;;  %v155_v47 = vrot.slane %v1136_v40, %v1309_v37  ;;  %v1143_v49 = vld [vmem:[#allocation2 + $0x64] ss:$16 sps:$4 sm:$0xff]   ;;  %v162_v52 = vrot.slane %v1142_v45, %v1309_v37  ;;  %v1151_v9 = vld [vmem:[#allocation5 + $0x188] sm:$0xff]  }
  0x39   :  { %1031 = vmatpush3.bf16.msra.mxu1 %v1115_v15  ;;  %1010 = vmatprep.subr.bf16.mxu0 %v1116_v16  ;;  %v169_v48 = vrot.slane %v1138_v41, %v1309_v37  ;;  %v106_v54 = vcombine.high %v83_v42, %v97_v46  ;;  %v176_v56 = vrot.slane %v1143_v49, %v1309_v37  ;;  %v1147_v2 = vld [vmem:[#allocation5 + $0x180] sm:$0xff]   ;;  %v1152_v10 = vld [vmem:[#allocation5 + $0x150] sm:$0xff]   ;;  %v1156_v14 = vld [vmem:[#allocation5 + $0x158] sm:$0xff]  }
  0x3a   :  { %1032 = vmatprep.subr.bf16.mxu1 %v1117_v17  ;;  %v105_v57 = vcombine.low %v83_v42, %v97_v46  ;;  %v108_v59 = vcombine.high %v90_v50, %v104_v51  ;;  %v107_v61 = vcombine.low %v90_v50, %v104_v51  ;;  %v1153_v11 = vld [vmem:[#allocation5 + $0x1d0] sm:$0xff]   ;;  %v1157_v15 = vld [vmem:[#allocation5 + $0x1d8] sm:$0xff]   ;;  %v1167_v25 = vld [vmem:[#allocation5 + $0x1a8] sm:$0xff]  }
  0x3b   :  { %v178_v55 = vcombine.high %v155_v47, %v169_v48  ;;  %v177_v60 = vcombine.low %v155_v47, %v169_v48  ;;  %v180_v0 = vcombine.high %v162_v52, %v176_v56  ;;  %v179_v1 = vcombine.low %v162_v52, %v176_v56  ;;  %v1154_v12 = vld [vmem:[#allocation5 + $0x110] sm:$0xff]   ;;  %v1158_v16 = vld [vmem:[#allocation5 + $0x118] sm:$0xff]  }
  0x3c   :  { %1011 = vmatpush3.bf16.msra.mxu0 %v1118_v18  ;;  %v1155_v13 = vld [vmem:[#allocation5 + $0x190] sm:$0xff]   ;;  %v1159_v17 = vld [vmem:[#allocation5 + $0x198] sm:$0xff]   ;;  %v1160_v18 = vld [vmem:[#allocation5 + $0x160] sm:$0xff]  }
  0x3d   :  { %1033 = vmatpush3.bf16.msra.mxu1 %v1119_v19  ;;  %1012 = vmatprep.subr.bf16.mxu0 %v1120_v20  ;;  %v234_v63 = vpack.c.bf16 %v178_v55, %v106_v54  ;;  %v233_v3 = vpack.c.bf16 %v177_v60, %v105_v57  ;;  %v236_v5 = vpack.c.bf16 %v180_v0, %v108_v59  ;;  %v1161_v19 = vld [vmem:[#allocation5 + $0x1e0] sm:$0xff]   ;;  %v1168_v26 = vld [vmem:[#allocation5 + $0x170] sm:$0xff]   ;;  %v1174_v32 = vld [vmem:[#allocation5 + $0x138] sm:$0xff]  }
  0x3e   :  { %1034 = vmatprep.subr.bf16.mxu1 %v1121_v21  ;;  %v235_v6 = vpack.c.bf16 %v179_v1, %v107_v61  ;;  %v1162_v20 = vld [vmem:[#allocation5 + $0x120] sm:$0xff]   ;;  %v1169_v27 = vld [vmem:[#allocation5 + $0x1f0] sm:$0xff]   ;;  %v1175_v33 = vld [vmem:[#allocation5 + $0x1b8] sm:$0xff]  }
  0x3f   :  { %785 = vmatprep.mubr.bf16.mxu0 %v234_v63  ;;  %826 = vmatprep.mubr.bf16.mxu1 %v236_v5  ;;  %v1163_v21 = vld [vmem:[#allocation5 + $0x1a0] sm:$0xff]   ;;  %v1182_v38 = vld [vmem:[#allocation2 + $0x68] ss:$16 sps:$4 sm:$0xff]   ;;  %v1184_v39 = vld [vmem:[#allocation2 + $0xc] ss:$16 sps:$4 sm:$0xff]  }
  0x40   :  { %1013 = vmatpush3.bf16.msra.mxu0 %v1122_v22  ;;  %v1164_v22 = vld [vmem:[#allocation5 + $0x168] sm:$0xff]   ;;  %v205_v46 = vrot.slane %v1182_v38, %v1309_v37  ;;  %v126_v47 = vrot.slane %v1184_v39, %v1309_v37 }
  0x41   :  { %1035 = vmatpush3.bf16.msra.mxu1 %v1123_v23  ;;  %1014 = vmatprep.subr.bf16.mxu0 %v1124_v24  ;;  %v1165_v23 = vld [vmem:[#allocation5 + $0x1e8] sm:$0xff]  }
  0x42   :  { %1036 = vmatprep.subr.bf16.mxu1 %v1125_v28  ;;  %v1166_v24 = vld [vmem:[#allocation5 + $0x128] sm:$0xff]   ;;  %v1170_v28 = vld [vmem:[#allocation5 + $0x130] sm:$0xff]  }
  0x43   :  { %v1185_v40 = vld [vmem:[#allocation2 + $0x2c] ss:$16 sps:$4 sm:$0xff]  }
  0x44   :  { %1015 = vmatpush3.bf16.msra.mxu0 %v1126_v29  ;;  %v1171_v29 = vld [vmem:[#allocation5 + $0x1b0] sm:$0xff]   ;;  %v1186_v44 = vld [vmem:[#allocation2 + $0x4c] ss:$16 sps:$4 sm:$0xff]   ;;  %v140_v48 = vrot.slane %v1185_v40, %v1309_v37 }
  0x45   :  { %1037 = vmatpush3.bf16.msra.mxu1 %v1127_v30  ;;  %1016 = vmatprep.subr.bf16.mxu0 %v1128_v31  ;;  %v1172_v30 = vld [vmem:[#allocation5 + $0x178] sm:$0xff]   ;;  %v198_v50 = vrot.slane %v1186_v44, %v1309_v37 }
  0x46   :  { %1038 = vmatprep.subr.bf16.mxu1 %v1129_v34  ;;  %v1173_v31 = vld [vmem:[#allocation5 + $0x1f8] sm:$0xff]   ;;  %v144_v54 = vcombine.high %v126_v47, %v140_v48  ;;  %v143_v56 = vcombine.low %v126_v47, %v140_v48 }
  0x47   :  { %v1176_v34 = vld [vmem:[#allocation2 + $0x8] ss:$16 sps:$4 sm:$0xff]   ;;  %v1187_v45 = vld [vmem:[#allocation2 + $0x6c] ss:$16 sps:$4 sm:$0xff]  }
  0x48   :  { %1017 = vmatpush3.bf16.msra.mxu0 %v1130_v35  ;;  %v1178_v35 = vld [vmem:[#allocation2 + $0x28] ss:$16 sps:$4 sm:$0xff]   ;;  %v119_v41 = vrot.slane %v1176_v34, %v1309_v37  ;;  %v212_v51 = vrot.slane %v1187_v45, %v1309_v37 }
  0x49   :  { %1039 = vmatpush3.bf16.msra.mxu1 %v1131_v36  ;;  %1046 = vmatprep.subr.bf16.mxu0 %v1144_v53  ;;  %v1180_v36 = vld [vmem:[#allocation2 + $0x48] ss:$16 sps:$4 sm:$0xff]   ;;  %v133_v42 = vrot.slane %v1178_v35, %v1309_v37 }
  0x4a   :  { %1068 = vmatprep.subr.bf16.mxu1 %v1145_v58  ;;  %v191_v43 = vrot.slane %v1180_v36, %v1309_v37  ;;  %v216_v57 = vcombine.high %v198_v50, %v212_v51  ;;  %v215_v58 = vcombine.low %v198_v50, %v212_v51 }
  0x4b   :  { %786 = vmatmul.mubr.bf16.vlgmr.msra.gmra.mrb[0].mxu0 %v233_v3  ;;  %v142_v49 = vcombine.high %v119_v41, %v133_v42  ;;  %v141_v52 = vcombine.low %v119_v41, %v133_v42 }
  0x4c   :  { %1047 = vmatpush3.bf16.msra.mxu0 %v1146_v62  ;;  %827 = vmatmul.mubr.bf16.vlgmr.msra.gmra.mrb[0].mxu1 %v235_v6  ;;  %v214_v53 = vcombine.high %v191_v43, %v205_v46  ;;  %v213_v55 = vcombine.low %v191_v43, %v205_v46  ;;  %v240_v61 = vpack.c.bf16 %v216_v57, %v144_v54 }
  0x4d   :  { %1048 = vmatprep.subr.bf16.mxu0 %v1148_v4  ;;  %1069 = vmatpush3.bf16.msra.mxu1 %v1147_v2  ;;  %v239_v62 = vpack.c.bf16 %v215_v58, %v143_v56 }
  0x4e   :  { %1070 = vmatprep.subr.bf16.mxu1 %v1149_v7  ;;  %v238_v59 = vpack.c.bf16 %v214_v53, %v142_v49  ;;  %v237_v60 = vpack.c.bf16 %v213_v55, %v141_v52  ;;  %908 = vmatprep.mubr.bf16.mxu1 %v240_v61 }
  0x50   :  { %1049 = vmatpush3.bf16.msra.mxu0 %v1150_v8  ;;  %867 = vmatprep.mubr.bf16.mxu0 %v238_v59 }
  0x51   :  { %1050 = vmatprep.subr.bf16.mxu0 %v1152_v10  ;;  %1071 = vmatpush3.bf16.msra.mxu1 %v1151_v9 }
  0x52   :  { %1072 = vmatprep.subr.bf16.mxu1 %v1153_v11 }
  0x54   :  { %1051 = vmatpush3.bf16.msra.mxu0 %v1154_v12 }
  0x55   :  { %1052 = vmatprep.subr.bf16.mxu0 %v1156_v14  ;;  %1073 = vmatpush3.bf16.msra.mxu1 %v1155_v13 }
  0x56   :  { %1074 = vmatprep.subr.bf16.mxu1 %v1157_v15 }
  0x58   :  { %1053 = vmatpush3.bf16.msra.mxu0 %v1158_v16 }
  0x59   :  { %1054 = vmatprep.subr.bf16.mxu0 %v1160_v18  ;;  %1075 = vmatpush3.bf16.msra.mxu1 %v1159_v17 }
  0x5a   :  { %1076 = vmatprep.subr.bf16.mxu1 %v1161_v19 }
  0x5c   :  { %1055 = vmatpush3.bf16.msra.mxu0 %v1162_v20 }
  0x5d   :  { %1056 = vmatprep.subr.bf16.mxu0 %v1164_v22  ;;  %1077 = vmatpush3.bf16.msra.mxu1 %v1163_v21 }
  0x5e   :  { %1078 = vmatprep.subr.bf16.mxu1 %v1165_v23 }
  0x60   :  { %1057 = vmatpush3.bf16.msra.mxu0 %v1166_v24 }
  0x61   :  { %1058 = vmatprep.subr.bf16.mxu0 %v1168_v26  ;;  %1079 = vmatpush3.bf16.msra.mxu1 %v1167_v25 }
  0x62   :  { %1080 = vmatprep.subr.bf16.mxu1 %v1169_v27 }
  0x64   :  { %1059 = vmatpush3.bf16.msra.mxu0 %v1170_v28 }
  0x65   :  { %1060 = vmatprep.subr.bf16.mxu0 %v1172_v30  ;;  %1081 = vmatpush3.bf16.msra.mxu1 %v1171_v29 }
  0x66   :  { %1082 = vmatprep.subr.bf16.mxu1 %v1173_v31 }
  0x68   :  { %1061 = vmatpush3.bf16.msra.mxu0 %v1174_v32 }
  0x69   :  { %1083 = vmatpush3.bf16.msra.mxu1 %v1175_v33 }
  0x6b   :  { %868 = vmatmul.mubr.bf16.vlgmr.msra.gmra.mrb[4].mxu0 %v237_v60 }
  0x6c   :  { %909 = vmatmul.mubr.bf16.vlgmr.msra.gmra.mrb[4].mxu1 %v239_v62 }
 0x11e   :  { %v1018_v63 = vpop.f32.mrb[0].mxu0 }
 0x11f   :  { %v1019_v0 = vpop.f32.mrb[1].mxu0  ;;  %v1040_v1 = vpop.f32.mrb[0].mxu1 }
 0x120   :  { %v1020_v2 = vadd.f32 %v1019_v0, %v1018_v63  ;;  %v1021_v37 = vpop.f32.mrb[2].mxu0  ;;  %v1041_v3 = vpop.f32.mrb[1].mxu1 }
 0x121   :  { %v1022_v4 = vpop.f32.mrb[3].mxu0  ;;  %v1042_v5 = vadd.f32 %v1041_v3, %v1040_v1  ;;  %v1043_v6 = vpop.f32.mrb[2].mxu1 }
 0x122   :  { %v1023_v7 = vadd.f32 %v1022_v4, %v1021_v37  ;;  %v1044_v8 = vpop.f32.mrb[3].mxu1 }
 0x123   :  { %v829_v9 = vadd.f32 %v1042_v5, %v1020_v2  ;;  %v1045_v10 = vadd.f32 %v1044_v8, %v1043_v6 }
 0x125   :  { %v832_v11 = vadd.f32 %v1045_v10, %v1023_v7 }
 0x13e   :  { %v1062_v12 = vpop.f32.mrb[4].mxu0 }
 0x13f   :  { %v1084_v13 = vpop.f32.mrb[4].mxu1  ;;  %v1063_v14 = vpop.f32.mrb[5].mxu0 }
 0x140   :  { %v1064_v15 = vadd.f32 %v1063_v14, %v1062_v12  ;;  %v1085_v16 = vpop.f32.mrb[5].mxu1  ;;  %v1065_v17 = vpop.f32.mrb[6].mxu0 }
 0x141   :  { %v1086_v18 = vadd.f32 %v1085_v16, %v1084_v13  ;;  %v1087_v19 = vpop.f32.mrb[6].mxu1  ;;  %v1066_v20 = vpop.f32.mrb[7].mxu0 }
 0x142   :  { %v870_v21 = vadd.f32 %v1064_v15, %v829_v9  ;;  %v1067_v22 = vadd.f32 %v1066_v20, %v1065_v17  ;;  %v1088_v23 = vpop.f32.mrb[7].mxu1 }
 0x143   :  { %v1089_v24 = vadd.f32 %v1088_v23, %v1087_v19 }
 0x144   :  { %v911_v25 = vadd.f32 %v1086_v18, %v870_v21  ;;  %v873_v26 = vadd.f32 %v1067_v22, %v832_v11 }
 0x146   :  { %918 = vst.msk [vmem:[#allocation7] sm:$0xff] %vm917_vm0, %v911_v25  ;;  %v914_v27 = vadd.f32 %v1089_v24, %v873_v26 }
 0x148   :  { %919 = vst.msk [vmem:[#allocation7 + $0x8] sm:$0xff] %vm917_vm0, %v914_v27 }
 0x149   :  { %924 = vsyncadd [#allocation4], 224  ;;  %s1267_s1 = smov [#allocation7]  }
 0x14a   :  { %s925_s9 = sshll.u32 %s1267_s1, 4  ;;  %s926_s9 = int_to_ptr.vmem [resolvable:$true] %s925_s9 }
 0x14b   :  { %s1232_s10 = scalar_lea.vmem %s926_s9, 32  ;;  %s1236_s11 = scalar_lea.vmem %s926_s9, 256 }
 0x14c   :  { %p1233_p2 = scmp.ne.s32.totalorder %s926_s9, %s1232_s10  ;;  %p1237_p3 = scmp.lt.s32.totalorder %s926_s9, %s926_s9 }
 0x14d   :  { %p1238_p4 = scmp.lt.s32.totalorder %s1236_s11, %s1232_s10 }
 0x14f   :  { %p1239_p5 = por %p1238_p4, %p1237_p3 }
 0x151   :  { %p1240_p6 = pnand %p1239_p5, %p1233_p2 }
 0x153   :  { %1243 = shalt.err (!%p1240_p6)
}
 0x154   :  { %s1244_s14 = scalar_lea.hbm %s1341_s2, 32 }
 0x155   :  { %p1245_p7 = scmp.ne.s32.totalorder %s1341_s2, %s1244_s14  ;;  %p1248_p8 = scmp.lt.u32.totalorder %s1244_s14, %s1341_s2 }
 0x157   :  { %p1250_p9 = pnand %p1248_p8, %p1245_p7 }
 0x159   :  { %1253 = shalt.err (!%p1250_p9)
}
 0x15a   :  { %s1268_s19 = smov 32   ;;  %s1269_s20 = smov 2  }
 0x15b   :  { %931 = dma.vmem_to_hbm [thread:$0]  %s926_s9, 32, %s1341_s2, [#allocation4], %s1268_s19, %s1268_s19, %s1269_s20  }
 0x15c   :  { %1258 = dma.done.wait [#allocation4], 256  }
 0x15d   :  { %1259 = vsyncadd [#allocation4], 4294967040 }
 0x15e   :  { %935 = vsyncpa [#allocation3], 1 }
 0x15f   :  { %936 = vsyncpa [#allocation6], 1 }
 0x160   :  { %937 = vsyncpa [#allocation4], 1 }

</bundles_post_ra>
